<compile_context>
chip_gen: v7x
topology: tpu7x:2x2x1
jax: 0.10.0
libtpu: 0.0.40
codegen_flags: <defaults>
</compile_context>

<pallas_src>
import functools

import jax
import jax.numpy as jnp
from jax.experimental import pallas as pl
from jax.experimental.pallas import tpu as pltpu


# Intermediate dtype for the per-tap matmul result (the big tensor, 4x C_out).
_TAP_DTYPE = jnp.bfloat16
_MiB = 1024 * 1024


def _round_up(v, m):
    return ((v + m - 1) // m) * m


def _vmem_params():
    """Generation-aware (tile_budget_bytes, vmem_limit_bytes, two_tensorcores)."""
    cap = None
    try:
        info = pltpu.get_tpu_info()
        cap = int(getattr(info, "vmem_capacity_bytes"))
    except Exception:
        cap = None
    if cap is not None and cap > 64 * _MiB:
        # v5e / v6e: 128 MiB physical VMEM, single TensorCore per chip.
        return 56 * _MiB, 64 * _MiB, False
    # v7x-like (64 MiB physical per TC, 2 TCs) or unknown: conservative settings
    # that are safe on every generation.
    return 40 * _MiB, 48 * _MiB, True


def _upconv_kernel(x_ref, w_ref, o_ref):
    # x_ref: (1, C_in, ts) f32   w_ref: (4*C_out, C_in) bf16   o_ref: (1, 4*C_out, ts) bf16
    x_bf = x_ref[0].astype(jnp.bfloat16)            # bf16 x bf16 -> f32 single-pass MXU
    acc = jnp.dot(w_ref[...], x_bf, preferred_element_type=jnp.float32)
    o_ref[0] = acc.astype(o_ref.dtype)


def _pick_spatial_tile(hw, c_in, kc, n_batch, *, tile_budget, two_cores, weight_buffers):
    """Largest lane-aligned spatial tile whose true VMEM footprint fits the budget."""
    c_in_s = _round_up(c_in, 8)    # sublane padding of the f32 input block
    kc_s = _round_up(kc, 16)       # sublane padding of the bf16 output block
    # Bytes that scale with the spatial tile width ts (per lane of ts):
    per_ts = (2 * c_in_s * 4       # double-buffered f32 input block
              + c_in_s * 2         # in-kernel bf16 cast temp of the x tile
              + 2 * kc_s * 2       # double-buffered bf16 output block
              + kc_s * 4)          # f32 MXU accumulator temp
    # Grid-invariant bf16 weight block (single- or double-buffered) + headroom.
    fixed = weight_buffers * kc_s * _round_up(c_in, 128) * 2
    fixed += 1 * _MiB              # compiler-internal scratch headroom
    avail = tile_budget - fixed
    ts = max(avail // per_ts, 128)
    ts = min(ts, 16384)
    if two_cores and n_batch == 1 and hw > 256:
        # Keep >=2 spatial grid steps so both TensorCores get work (v7x only).
        half = (hw + 1) // 2
        ts = min(ts, _round_up(half, 128))
    if hw <= ts:
        return hw                           # full-width block (always layout-legal)
    return max(128, (ts // 128) * 128)      # 128-aligned lane axis; ragged tail OK


def upconv_taps(x_mat, w_flat, *, out_dtype=_TAP_DTYPE, single_buffer_weights=True):
    """x_mat: (N, C_in, H*W) f32, w_flat: (4*C_out, C_in) bf16
    -> (N, 4*C_out, H*W) bf16 with tap rows ordered (oc major, kh, kw minor)."""
    n_batch, c_in, hw = x_mat.shape
    kc = w_flat.shape[0]

    tile_budget, vmem_limit, two_cores = _vmem_params()
    weight_buffers = 1 if single_buffer_weights else 2
    ts = _pick_spatial_tile(hw, c_in, kc, n_batch, tile_budget=tile_budget,
                            two_cores=two_cores, weight_buffers=weight_buffers)
    grid = (n_batch, pl.cdiv(hw, ts))

    w_spec_kwargs = {}
    if single_buffer_weights:
        # Constant index_map -> DMA'd once; single-buffering halves its VMEM.
        w_spec_kwargs["pipeline_mode"] = pl.Buffered(1)
    w_spec = pl.BlockSpec((kc, c_in), lambda n, j: (0, 0), **w_spec_kwargs)

    return pl.pallas_call(
        _upconv_kernel,
        out_shape=jax.ShapeDtypeStruct((n_batch, kc, hw), out_dtype),
        grid_spec=pltpu.PrefetchScalarGridSpec(
            num_scalar_prefetch=0,
            grid=grid,
            in_specs=[
                pl.BlockSpec((1, c_in, ts), lambda n, j: (n, 0, j)),
                w_spec,
            ],
            out_specs=pl.BlockSpec((1, kc, ts), lambda n, j: (n, 0, j)),
        ),
        compiler_params=pltpu.CompilerParams(
            dimension_semantics=("parallel", "parallel"),
            vmem_limit_bytes=vmem_limit,
        ),
    )(x_mat, w_flat)


def up_conv_forward(x_nchw, weight, bias, *, out_dtype=None, single_buffer_weights=True):
    """Forward pass of up_conv.

    x_nchw: (N, C_in, H, W)      — PyTorch NCHW input
    weight: (C_in, C_out, 2, 2)  — PyTorch ConvTranspose2d weight layout
    bias:   (C_out,)
    returns (N, C_out, 2H, 2W)   — PyTorch NCHW output (dtype = out_dtype or x dtype)
    """
    n_batch, c_in, h, w = x_nchw.shape
    c_out = weight.shape[1]
    kc = 4 * c_out
    out_dtype = x_nchw.dtype if out_dtype is None else out_dtype

    # NCHW -> (N, C_in, H*W): contiguous reshape, no copy.
    x_mat = x_nchw.reshape(n_batch, c_in, h * w)

    # Pack taps along rows, oc major: w_flat[oc*4 + kh*2 + kw, ic] = weight[ic, oc, kh, kw].
    # Stored as bf16 so the MXU gets explicit bf16 operands.
    w_flat = jnp.transpose(weight, (1, 2, 3, 0)).reshape(kc, c_in).astype(jnp.bfloat16)

    y = upconv_taps(x_mat, w_flat,
                    single_buffer_weights=single_buffer_weights)   # (N, kc, H*W) bf16

    # Single fused epilogue: bias add + (kh, kw) interleave + dtype convert.
    y = y.reshape(n_batch, c_out, 2, 2, h, w).astype(jnp.float32)  # (n, oc, kh, kw, h, w)
    y = y + bias[None, :, None, None, None, None]
    y = jnp.transpose(y, (0, 1, 4, 2, 5, 3))                       # (n, oc, h, kh, w, kw)
    return y.reshape(n_batch, c_out, 2 * h, 2 * w).astype(out_dtype)


def _reference(x_nchw, weight, bias):
    """Pure-JAX f32 reference of ConvTranspose2d(k=2, s=2)."""
    n_batch, c_in, h, w = x_nchw.shape
    c_out = weight.shape[1]
    y = jnp.einsum("nihw,iokl->nhwklo", x_nchw, weight) + bias  # (n,h,w,kh,kw,oc)
    y = jnp.transpose(y, (0, 1, 3, 2, 4, 5)).reshape(n_batch, 2 * h, 2 * w, c_out)
    return jnp.transpose(y, (0, 3, 1, 2))


if __name__ == "__main__":
    key = jax.random.PRNGKey(0)
    k_x, k_w, k_b = jax.random.split(key, 3)

    N, in_ch, out_ch, H, W = 2, 4, 8, 16, 16

    x = jax.random.normal(k_x, (N, in_ch, H, W), dtype=jnp.float32)
    # Deterministic synthetic parameters (PyTorch weight layout: (in_ch, out_ch, 2, 2)).
    fan = in_ch * 2 * 2
    bound = 1.0 / (fan ** 0.5)
    weight = jax.random.uniform(k_w, (in_ch, out_ch, 2, 2),
                                minval=-bound, maxval=bound, dtype=jnp.float32)
    bias = jax.random.uniform(k_b, (out_ch,),
                              minval=-bound, maxval=bound, dtype=jnp.float32)

    fwd = jax.jit(functools.partial(up_conv_forward, single_buffer_weights=True))
    try:
        out = jax.block_until_ready(fwd(x, weight, bias))
    except Exception:
        # Fallback: if this JAX build rejects pipeline_mode=pl.Buffered(1), rerun
        # with default double-buffering of the (grid-invariant) weight block.
        fwd = jax.jit(functools.partial(up_conv_forward, single_buffer_weights=False))
        out = jax.block_until_ready(fwd(x, weight, bias))

    assert out.shape == (N, out_ch, 2 * H, 2 * W), out.shape
    ref = _reference(x, weight, bias)
    max_err = float(jnp.max(jnp.abs(out - ref)))
    # bf16 MXU operands + bf16 tap intermediate (f32 accumulation) => loose tolerance.
    assert jnp.allclose(out, ref, atol=3e-2, rtol=3e-2), max_err

    print("KERNEL_OK")
</pallas_src>

<mosaic_0001>
module attributes {stable_mosaic.version = 11 : i64} {
  func.func @_upconv_kernel(%arg0: i32, %arg1: i32, %arg2: memref<1x4x256xf32, #tpu.memory_space<vmem>>, %arg3: memref<32x4xbf16, #tpu.memory_space<vmem>>, %arg4: memref<1x32x256xbf16, #tpu.memory_space<vmem>>) attributes {dimension_semantics = [#tpu.dimension_semantics<parallel>, #tpu.dimension_semantics<parallel>], iteration_bounds = array<i64: 2, 1>, scalar_prefetch = 0 : i64, scratch_operands = 0 : i64, tpu.core_type = #tpu.core_type<tc>, window_params = [{transform_indices = @transform_0, window_bounds = array<i64: 1, 4, 256>}, {pipeline_mode = #tpu.pipeline_mode<synchronous>, transform_indices = @transform_1, window_bounds = array<i64: 32, 4>}, {transform_indices = @transform_2, window_bounds = array<i64: 1, 32, 256>}]} {
    %c0 = arith.constant 0 : index
    %c0_0 = arith.constant 0 : index
    %c0_1 = arith.constant 0 : index
    %0 = vector.load %arg2[%c0, %c0_0, %c0_1] : memref<1x4x256xf32, #tpu.memory_space<vmem>>, vector<1x4x256xf32>
    %1 = vector.shape_cast %0 : vector<1x4x256xf32> to vector<4x256xf32>
    %2 = arith.truncf %1 : vector<4x256xf32> to vector<4x256xbf16>
    %c0_2 = arith.constant 0 : index
    %c0_3 = arith.constant 0 : index
    %3 = vector.load %arg3[%c0_2, %c0_3] : memref<32x4xbf16, #tpu.memory_space<vmem>>, vector<32x4xbf16>
    %cst = arith.constant dense<0.000000e+00> : vector<32x256xf32>
    %4 = tpu.matmul %3, %2, %cst {dimension_numbers = #tpu.dot_dimension_numbers<[1], [0], [0], [1], [0, 0, 1, 1], [], []>} : vector<32x4xbf16>, vector<4x256xbf16>, vector<32x256xf32> -> vector<32x256xf32>
    %5 = arith.truncf %4 : vector<32x256xf32> to vector<32x256xbf16>
    %c0_4 = arith.constant 0 : index
    %c0_5 = arith.constant 0 : index
    %c0_6 = arith.constant 0 : index
    %6 = vector.load %arg4[%c0_4, %c0_5, %c0_6] : memref<1x32x256xbf16, #tpu.memory_space<vmem>>, vector<1x32x256xbf16>
    %7 = vector.shape_cast %6 : vector<1x32x256xbf16> to vector<32x256xbf16>
    %8 = vector.shape_cast %5 : vector<32x256xbf16> to vector<1x32x256xbf16>
    tpu.vector_store %arg4[%c0_4, %c0_5, %c0_6], %8 {strides = array<i32>} : memref<1x32x256xbf16, #tpu.memory_space<vmem>>, vector<1x32x256xbf16>,
    return
  }
  func.func @transform_0(%arg0: i32, %arg1: i32) -> (i32, i32, i32) {
    %c0_i32 = arith.constant 0 : i32
    %c0_i32_0 = arith.constant 0 : i32
    return %arg0, %c0_i32, %arg1 : i32, i32, i32
  }
  func.func @transform_1(%arg0: i32, %arg1: i32) -> (i32, i32) {
    %c0_i32 = arith.constant 0 : i32
    %c0_i32_0 = arith.constant 0 : i32
    %c0_i32_1 = arith.constant 0 : i32
    return %c0_i32, %c0_i32_0 : i32, i32
  }
  func.func @transform_2(%arg0: i32, %arg1: i32) -> (i32, i32, i32) {
    %c0_i32 = arith.constant 0 : i32
    %c0_i32_0 = arith.constant 0 : i32
    return %arg0, %c0_i32, %arg1 : i32, i32, i32
  }
}

module attributes {stable_mosaic.version = 11 : i64} {
  func.func @_upconv_kernel(%arg0: i32, %arg1: i32, %arg2: memref<1x4x256xf32, #tpu.memory_space<vmem>>, %arg3: memref<32x4xbf16, #tpu.memory_space<vmem>>, %arg4: memref<1x32x256xbf16, #tpu.memory_space<vmem>>) attributes {dimension_semantics = [#tpu.dimension_semantics<parallel>, #tpu.dimension_semantics<parallel>], iteration_bounds = array<i64: 2, 1>, scalar_prefetch = 0 : i64, scratch_operands = 0 : i64, tpu.core_type = #tpu.core_type<tc>, window_params = [{transform_indices = @transform_0, window_bounds = array<i64: 1, 4, 256>}, {pipeline_mode = #tpu.pipeline_mode<synchronous>, transform_indices = @transform_1, window_bounds = array<i64: 32, 4>}, {transform_indices = @transform_2, window_bounds = array<i64: 1, 32, 256>}]} {
    %c0 = arith.constant 0 : index
    %c0_0 = arith.constant 0 : index
    %c0_1 = arith.constant 0 : index
    %0 = vector.load %arg2[%c0, %c0_0, %c0_1] : memref<1x4x256xf32, #tpu.memory_space<vmem>>, vector<1x4x256xf32>
    %1 = vector.shape_cast %0 : vector<1x4x256xf32> to vector<4x256xf32>
    %2 = arith.truncf %1 : vector<4x256xf32> to vector<4x256xbf16>
    %c0_2 = arith.constant 0 : index
    %c0_3 = arith.constant 0 : index
    %3 = vector.load %arg3[%c0_2, %c0_3] : memref<32x4xbf16, #tpu.memory_space<vmem>>, vector<32x4xbf16>
    %cst = arith.constant dense<0.000000e+00> : vector<32x256xf32>
    %4 = tpu.matmul %3, %2, %cst {dimension_numbers = #tpu.dot_dimension_numbers<[1], [0], [0], [1], [0, 0, 1, 1], [], []>} : vector<32x4xbf16>, vector<4x256xbf16>, vector<32x256xf32> -> vector<32x256xf32>
    %5 = arith.truncf %4 : vector<32x256xf32> to vector<32x256xbf16>
    %c0_4 = arith.constant 0 : index
    %c0_5 = arith.constant 0 : index
    %c0_6 = arith.constant 0 : index
    %6 = vector.load %arg4[%c0_4, %c0_5, %c0_6] : memref<1x32x256xbf16, #tpu.memory_space<vmem>>, vector<1x32x256xbf16>
    %7 = vector.shape_cast %6 : vector<1x32x256xbf16> to vector<32x256xbf16>
    %8 = vector.shape_cast %5 : vector<32x256xbf16> to vector<1x32x256xbf16>
    tpu.vector_store %arg4[%c0_4, %c0_5, %c0_6], %8 {strides = array<i32>} : memref<1x32x256xbf16, #tpu.memory_space<vmem>>, vector<1x32x256xbf16>,
    return
  }
  func.func @transform_0(%arg0: i32, %arg1: i32) -> (i32, i32, i32) {
    %c0_i32 = arith.constant 0 : i32
    %c0_i32_0 = arith.constant 0 : i32
    return %arg0, %c0_i32, %arg1 : i32, i32, i32
  }
  func.func @transform_1(%arg0: i32, %arg1: i32) -> (i32, i32) {
    %c0_i32 = arith.constant 0 : i32
    %c0_i32_0 = arith.constant 0 : i32
    %c0_i32_1 = arith.constant 0 : i32
    return %c0_i32, %c0_i32_0 : i32, i32
  }
  func.func @transform_2(%arg0: i32, %arg1: i32) -> (i32, i32, i32) {
    %c0_i32 = arith.constant 0 : i32
    %c0_i32_0 = arith.constant 0 : i32
    return %arg0, %c0_i32, %arg1 : i32, i32, i32
  }
}

</mosaic_0001>

<bundles_post_ra>
// kernel: up_conv_forward.1
= control target key start
LH: loop header
LB: loop body
LE: loop exit
PB: predicated region body
PF: predicated region fallthrough
CT: control target
= control target key end

     0   :  { %s482_s9 = smov 0   ;;  %s484_s10 = smov 0   ;;  %s521_s0 = inlined_call_operand.vmem [shape: f32[2,4,256], index: 0, kind: input, shape index: {}]   ;;  %s522_s1 = inlined_call_operand.vmem [shape: bf16[32,4], index: 1, kind: input, shape index: {}]   ;;  %s523_s2 = inlined_call_operand.vmem [shape: bf16[2,32,256], index: 2, kind: output, shape index: {}]  }
   0x1   :  { %s486_s11 = smov 0  }
   0x2 LB: > { %s24_s12 = sadd.s32 1, %s460_s10  ;;  %p390_p0 = scmp.ge.s32.totalorder %s464_s11, 1  ;;  %s464_s11 = sphi %s486_s11, %s12_s11   ;;  %s460_s10 = sphi %s484_s10, %s525_s10   ;;  %s456_s9 = sphi %s482_s9, %s524_s9  }
   0x3   : > { %p26_p1 = scmp.ge.s32.totalorder %s24_s12, 2  ;;  %p133_p2 = scmp.lt.s32.totalorder %s464_s11, 3 }
   0x5   : > { %s527_s12 = smov (%p26_p1, %s24_s12), 0  ;;  %p134_p3 = pnand %p390_p0, %p133_p2 }
   0x6   : > { %p164_p4 = scmp.lt.s32.totalorder (!%p134_p3), %s456_s9, 1  ;;  %v466_v0 = vmov (!%p134_p3), 0   ;;  %vm211_vm0 = vcmask (!%p134_p3), 1041408   ;;  %v440_v6 = vld [vmem:[%s522_s1] sm:$0xff] (!%p134_p3)   ;;  %v441_v7 = vld [vmem:[%s522_s1 + $0x8] sm:$0xff] (!%p134_p3)   ;;  %vm204_vm1 = vcmask (!%p134_p3), 31744  }
   0x7   : > { %137 = sbr.rel (%p134_p3) target bundleno = 244 (0xf4), region = 28  ;;  %250 = vmatprep.mubr.bf16.mxu0 (!%p134_p3), %v466_v0  ;;  %260 = vmatprep.mubr.bf16.mxu1 (!%p134_p3), %v466_v0 }
   0xe   : > { %s529_s9 = smov (!%p164_p4, %s456_s9), 1 }
   0xf   : > { %s406_s13 = sshll.u32 %s529_s9, 3  ;;  %s407_s21 = sshll.u32 %s529_s9, 5 }
  0x10   : > { %s171_s16 = scalar_lea.vmem %s521_s0, %s406_s13  ;;  %s181_s24 = scalar_lea.vmem %s523_s2, %s407_s21 }
  0x11   : > { %v184_v1 = vld [vmem:[%s171_s16] sm:$0xff] }
  0x12   : > { %v186_v2 = vcombine.high %v184_v1, %v184_v1  ;;  %v188_v3 = vpack.c.bf16 %v184_v1, %v184_v1 }
  0x14   : > { %v189_v4 = vpack.c.bf16 %v186_v2, %v186_v2  ;;  %v213_v5 = vsel %vm211_vm0, %v188_v3, 0 }
  0x16   : > { %397 = vmatprep.subr.msk.bf16.mxu0 %vm211_vm0, %v189_v4  ;;  %412 = vmatprep.subr.msk.bf16.mxu1 %vm211_vm0, %v189_v4 }
  0x17   : > { %219 = vmatpush1.bf16.msra.mxu0 %v213_v5  ;;  %413 = vmatpush1.bf16.msra.mxu1 %v213_v5 }
  0x1a   : > { %398 = vmatmul.mubr.msk.bf16.vlgmr.msra.gmra.mrb[0].mxu0 %vm204_vm1, %v440_v6  ;;  %399 = vmatmul.mubr.msk.bf16.vlgmr.msra.gmra.mrb[0].mxu1 %vm204_vm1, %v441_v7 }
  0xed   : > { %v252_v8 = vpop.f32.mrb[0].mxu0  ;;  %v262_v9 = vpop.f32.mrb[0].mxu1 }
  0xee   : > { %v254_v10 = vpop.f32.mrb[1].mxu0  ;;  %v264_v11 = vpop.f32.mrb[1].mxu1 }
  0xef   : > { %v408_v12 = vpack.c.bf16 %v254_v10, %v252_v8  ;;  %v410_v13 = vpack.c.bf16 %v264_v11, %v262_v9  ;;  %v256_v14 = vpop.f32.mrb[2].mxu0  ;;  %v266_v15 = vpop.f32.mrb[2].mxu1 }
  0xf0   : > { %v258_v16 = vpop.f32.mrb[3].mxu0  ;;  %v268_v17 = vpop.f32.mrb[3].mxu1 }
  0xf1   : > { %295 = vst [vmem:[%s181_s24] sm:$0xff] %v408_v12  ;;  %297 = vst [vmem:[%s181_s24 + $0x10] sm:$0xff] %v410_v13  ;;  %v409_v18 = vpack.c.bf16 %v258_v16, %v256_v14  ;;  %v411_v19 = vpack.c.bf16 %v268_v17, %v266_v15 }
  0xf3   : > { %296 = vst [vmem:[%s181_s24 + $0x8] sm:$0xff] %v409_v18  ;;  %298 = vst [vmem:[%s181_s24 + $0x18] sm:$0xff] %v411_v19 }
  0xf4 PF: > { %s12_s11 = sadd.s32 1, %s464_s11   ;;  %s524_s9 = smov %s460_s10 }
  0xf5   : > { %p9_p5 = scmp.ge.s32.totalorder %s12_s11, 4   ;;  %s525_s10 = smov %s527_s12 }
  0xf7   :  { %11 = sbr.rel (!%p9_p5) target bundleno = 2 (0x2), region = 58 }

// kernel: up_conv_forward.1
= control target key start
LH: loop header
LB: loop body
LE: loop exit
PB: predicated region body
PF: predicated region fallthrough
CT: control target
= control target key end

     0   :  { %s482_s9 = smov 0   ;;  %s484_s10 = smov 0   ;;  %s521_s0 = inlined_call_operand.vmem [shape: f32[2,4,256], index: 0, kind: input, shape index: {}]   ;;  %s522_s1 = inlined_call_operand.vmem [shape: bf16[32,4], index: 1, kind: input, shape index: {}]   ;;  %s523_s2 = inlined_call_operand.vmem [shape: bf16[2,32,256], index: 2, kind: output, shape index: {}]  }
   0x1   :  { %s486_s11 = smov 0  }
   0x2 LB: > { %s24_s12 = sadd.s32 1, %s460_s10  ;;  %p390_p0 = scmp.ge.s32.totalorder %s464_s11, 1  ;;  %s464_s11 = sphi %s486_s11, %s12_s11   ;;  %s460_s10 = sphi %s484_s10, %s525_s10   ;;  %s456_s9 = sphi %s482_s9, %s524_s9  }
   0x3   : > { %p26_p1 = scmp.ge.s32.totalorder %s24_s12, 2  ;;  %p133_p2 = scmp.lt.s32.totalorder %s464_s11, 3 }
   0x5   : > { %s527_s12 = smov (%p26_p1, %s24_s12), 0  ;;  %p134_p3 = pnand %p390_p0, %p133_p2 }
   0x6   : > { %p164_p4 = scmp.lt.s32.totalorder (!%p134_p3), %s456_s9, 1  ;;  %v466_v0 = vmov (!%p134_p3), 0   ;;  %vm211_vm0 = vcmask (!%p134_p3), 1041408   ;;  %v440_v6 = vld [vmem:[%s522_s1] sm:$0xff] (!%p134_p3)   ;;  %v441_v7 = vld [vmem:[%s522_s1 + $0x8] sm:$0xff] (!%p134_p3)   ;;  %vm204_vm1 = vcmask (!%p134_p3), 31744  }
   0x7   : > { %137 = sbr.rel (%p134_p3) target bundleno = 244 (0xf4), region = 28  ;;  %250 = vmatprep.mubr.bf16.mxu0 (!%p134_p3), %v466_v0  ;;  %260 = vmatprep.mubr.bf16.mxu1 (!%p134_p3), %v466_v0 }
   0xe   : > { %s529_s9 = smov (!%p164_p4, %s456_s9), 1 }
   0xf   : > { %s406_s13 = sshll.u32 %s529_s9, 3  ;;  %s407_s21 = sshll.u32 %s529_s9, 5 }
  0x10   : > { %s171_s16 = scalar_lea.vmem %s521_s0, %s406_s13  ;;  %s181_s24 = scalar_lea.vmem %s523_s2, %s407_s21 }
  0x11   : > { %v184_v1 = vld [vmem:[%s171_s16] sm:$0xff] }
  0x12   : > { %v186_v2 = vcombine.high %v184_v1, %v184_v1  ;;  %v188_v3 = vpack.c.bf16 %v184_v1, %v184_v1 }
  0x14   : > { %v189_v4 = vpack.c.bf16 %v186_v2, %v186_v2  ;;  %v213_v5 = vsel %vm211_vm0, %v188_v3, 0 }
  0x16   : > { %397 = vmatprep.subr.msk.bf16.mxu0 %vm211_vm0, %v189_v4  ;;  %412 = vmatprep.subr.msk.bf16.mxu1 %vm211_vm0, %v189_v4 }
  0x17   : > { %219 = vmatpush1.bf16.msra.mxu0 %v213_v5  ;;  %413 = vmatpush1.bf16.msra.mxu1 %v213_v5 }
  0x1a   : > { %398 = vmatmul.mubr.msk.bf16.vlgmr.msra.gmra.mrb[0].mxu0 %vm204_vm1, %v440_v6  ;;  %399 = vmatmul.mubr.msk.bf16.vlgmr.msra.gmra.mrb[0].mxu1 %vm204_vm1, %v441_v7 }
  0xed   : > { %v252_v8 = vpop.f32.mrb[0].mxu0  ;;  %v262_v9 = vpop.f32.mrb[0].mxu1 }
  0xee   : > { %v254_v10 = vpop.f32.mrb[1].mxu0  ;;  %v264_v11 = vpop.f32.mrb[1].mxu1 }
  0xef   : > { %v408_v12 = vpack.c.bf16 %v254_v10, %v252_v8  ;;  %v410_v13 = vpack.c.bf16 %v264_v11, %v262_v9  ;;  %v256_v14 = vpop.f32.mrb[2].mxu0  ;;  %v266_v15 = vpop.f32.mrb[2].mxu1 }
  0xf0   : > { %v258_v16 = vpop.f32.mrb[3].mxu0  ;;  %v268_v17 = vpop.f32.mrb[3].mxu1 }
  0xf1   : > { %295 = vst [vmem:[%s181_s24] sm:$0xff] %v408_v12  ;;  %297 = vst [vmem:[%s181_s24 + $0x10] sm:$0xff] %v410_v13  ;;  %v409_v18 = vpack.c.bf16 %v258_v16, %v256_v14  ;;  %v411_v19 = vpack.c.bf16 %v268_v17, %v266_v15 }
  0xf3   : > { %296 = vst [vmem:[%s181_s24 + $0x8] sm:$0xff] %v409_v18  ;;  %298 = vst [vmem:[%s181_s24 + $0x18] sm:$0xff] %v411_v19 }
  0xf4 PF: > { %s12_s11 = sadd.s32 1, %s464_s11   ;;  %s524_s9 = smov %s460_s10 }
  0xf5   : > { %p9_p5 = scmp.ge.s32.totalorder %s12_s11, 4   ;;  %s525_s10 = smov %s527_s12 }
  0xf7   :  { %11 = sbr.rel (!%p9_p5) target bundleno = 2 (0x2), region = 58 }

</bundles_post_ra>
